<compile_context>
chip_gen: v7x
topology: tpu7x:2x2x1
jax: 0.10.0
libtpu: 0.0.40
codegen_flags: <defaults>
</compile_context>

<pallas_src>
import jax
import jax.numpy as jnp
from jax.experimental import pallas as pl
from jax.experimental.pallas import tpu as pltpu


def _fused_gemv_mean_kernel(x_ref, w_ref, b_ref, o_ref):
    # x_ref: (tm, K)   streamed tile of r-folded input rows (VMEM, pipelined)
    # w_ref: (K, r)    block-diagonal mean-folded weight (VMEM-resident)
    # b_ref: (1,)      mean-folded bias scalar (SMEM)
    # o_ref: (tm, r)   o[m, j] = row-mean of model(x) for flat row m*r + j
    y = jnp.dot(x_ref[...], w_ref[...], preferred_element_type=jnp.float32)
    o_ref[...] = (y + b_ref[0]).astype(o_ref.dtype)


def _choose_row_tile(m_rows, row_bytes, target_bytes):
    """Row-tile sized in BYTES (multiple of 8 sublanes); >=2 tiles when cheap."""
    tm = max(8, (target_bytes // row_bytes) // 8 * 8)
    if m_rows <= tm:
        half = m_rows // 2
        if half >= 8 and half % 8 == 0:
            return half          # two tiles -> both v7x TensorCores get work
        return m_rows            # single full-extent tile (always legal)
    return tm


def model_wrapper_forward(x, weight, bias, *, target_tile_bytes=8 * 1024 * 1024):
    """ModelWrapper(Linear) forward: mean(x @ W^T + b, axis=-1).

    x: (B, S, H_in); weight: (H_out, H_in); bias: (H_out,)  ->  (B, S)
    """
    B, S, H_in = x.shape
    M = B * S
    out_dtype = x.dtype

    # ---- algebraic mean fold (exact because the model is linear) ----------
    # Cast params to f32 BEFORE the mean so the fold matches an f32 reference.
    w_eff = jnp.mean(weight.astype(jnp.float32), axis=0)        # (H_in,)
    b_eff = jnp.mean(bias.astype(jnp.float32)).reshape(1)       # (1,) scalar

    # ---- lane folding: r logical rows per 128-lane vreg row ---------------
    if H_in < 128 and 128 % H_in == 0 and M % (128 // H_in) == 0:
        r = 128 // H_in
    else:
        r = 1
    K = r * H_in
    M_r = M // r

    if r > 1:
        # w_blk[j*H_in + h, k] = w_eff[h] if j == k else 0  (block diagonal)
        w_blk = (jnp.eye(r, dtype=jnp.float32)[:, None, :]
                 * w_eff[None, :, None]).reshape(K, r)
    else:
        w_blk = w_eff.reshape(K, 1)
    w_blk = w_blk.astype(x.dtype)          # native bf16/f32 MXU operands

    # Free row-major reshape only: no pad, no dtype-upcast copy of x.
    x2d = x.reshape(M_r, K)

    # ---- tiling: sized in bytes; ragged last tile handled by Pallas -------
    row_bytes = K * x.dtype.itemsize
    tm = _choose_row_tile(M_r, row_bytes, target_tile_bytes)
    n_tiles = pl.cdiv(M_r, tm)

    cost = pl.CostEstimate(
        flops=2 * M * H_in,
        transcendentals=0,
        bytes_accessed=(M * H_in * x.dtype.itemsize            # x stream
                        + M_r * r * jnp.dtype(out_dtype).itemsize  # output
                        + K * r * w_blk.dtype.itemsize + 4),       # params
    )

    out = pl.pallas_call(
        _fused_gemv_mean_kernel,
        out_shape=jax.ShapeDtypeStruct((M_r, r), out_dtype),
        grid_spec=pltpu.PrefetchScalarGridSpec(
            num_scalar_prefetch=0,
            grid=(n_tiles,),
            in_specs=[
                pl.BlockSpec((tm, K), lambda i: (i, 0)),        # streamed x
                pl.BlockSpec((K, r), lambda i: (0, 0)),         # resident W
                pl.BlockSpec(memory_space=pltpu.MemorySpace.SMEM),  # bias
            ],
            out_specs=pl.BlockSpec((tm, r), lambda i: (i, 0)),
        ),
        compiler_params=pltpu.CompilerParams(
            dimension_semantics=("parallel",),   # no cross-tile carried state
            vmem_limit_bytes=48 * 1024 * 1024,   # safe on v7x, ample on v5e/v6e
        ),
        cost_estimate=cost,
    )(x2d, w_blk, b_eff)

    # (M_r, r) row-major == flat (M,) order by construction of the fold.
    return out.reshape(B, S)


if __name__ == "__main__":
    # Small shapes consistent with the forward: batch=2, seq=8, hidden=32.
    B, S, H_in, H_out = 2, 8, 32, 32

    key = jax.random.PRNGKey(0)
    kx, kw, kb = jax.random.split(key, 3)

    x = jax.random.normal(kx, (B, S, H_in), dtype=jnp.float32)
    # Deterministic synthetic Linear parameters (not a checkpoint).
    weight = jax.random.normal(kw, (H_out, H_in), dtype=jnp.float32) * 0.05
    bias = jax.random.normal(kb, (H_out,), dtype=jnp.float32) * 0.01

    out = jax.block_until_ready(model_wrapper_forward(x, weight, bias))

    # Pure-JAX reference of the exact ModelWrapper semantics.
    ref = jnp.mean(jnp.einsum("bsh,oh->bso", x, weight) + bias, axis=-1)
    assert out.shape == (B, S)
    assert jnp.allclose(out, ref, atol=1e-5, rtol=1e-5)

    print("KERNEL_OK")
</pallas_src>

<mosaic_0001>
module attributes {stable_mosaic.version = 11 : i64} {
  func.func @_fused_gemv_mean_kernel(%arg0: i32, %arg1: memref<4x128xf32, #tpu.memory_space<vmem>>, %arg2: memref<128x4xf32, #tpu.memory_space<vmem>>, %arg3: memref<1xf32, #tpu.memory_space<smem>>, %arg4: memref<4x4xf32, #tpu.memory_space<vmem>>) attributes {dimension_semantics = [#tpu.dimension_semantics<parallel>], iteration_bounds = array<i64: 1>, scalar_prefetch = 0 : i64, scratch_operands = 0 : i64, tpu.core_type = #tpu.core_type<tc>, window_params = [{transform_indices = @transform_0, window_bounds = array<i64: 4, 128>}, {pipeline_mode = #tpu.pipeline_mode<synchronous>, transform_indices = @transform_1, window_bounds = array<i64: 128, 4>}, {transform_indices = @transform_2, window_bounds = array<i64: 1>}, {transform_indices = @transform_3, window_bounds = array<i64: 4, 4>}]} {
    %c0 = arith.constant 0 : index
    %c0_0 = arith.constant 0 : index
    %0 = vector.load %arg1[%c0, %c0_0] : memref<4x128xf32, #tpu.memory_space<vmem>>, vector<4x128xf32>
    %c0_1 = arith.constant 0 : index
    %c0_2 = arith.constant 0 : index
    %1 = vector.load %arg2[%c0_1, %c0_2] : memref<128x4xf32, #tpu.memory_space<vmem>>, vector<128x4xf32>
    %cst = arith.constant dense<0.000000e+00> : vector<4x4xf32>
    %2 = tpu.matmul %0, %1, %cst {dimension_numbers = #tpu.dot_dimension_numbers<[1], [0], [0], [1], [0, 0, 1, 1], [], []>} : vector<4x128xf32>, vector<128x4xf32>, vector<4x4xf32> -> vector<4x4xf32>
    %c0_3 = arith.constant 0 : index
    %3 = memref.load %arg3[%c0_3] : memref<1xf32, #tpu.memory_space<smem>>
    %4 = vector.broadcast %3 : f32 to vector<4x4xf32>
    %5 = arith.addf %2, %4 : vector<4x4xf32>
    %c0_4 = arith.constant 0 : index
    %c0_5 = arith.constant 0 : index
    %6 = vector.load %arg4[%c0_4, %c0_5] : memref<4x4xf32, #tpu.memory_space<vmem>>, vector<4x4xf32>
    tpu.vector_store %arg4[%c0_4, %c0_5], %5 {strides = array<i32>} : memref<4x4xf32, #tpu.memory_space<vmem>>, vector<4x4xf32>,
    return
  }
  func.func @transform_0(%arg0: i32) -> (i32, i32) {
    %c0_i32 = arith.constant 0 : i32
    %c0_i32_0 = arith.constant 0 : i32
    return %arg0, %c0_i32 : i32, i32
  }
  func.func @transform_1(%arg0: i32) -> (i32, i32) {
    %c0_i32 = arith.constant 0 : i32
    %c0_i32_0 = arith.constant 0 : i32
    %c0_i32_1 = arith.constant 0 : i32
    return %c0_i32, %c0_i32_0 : i32, i32
  }
  func.func @transform_2(%arg0: i32) -> i32 {
    %c0_i32 = arith.constant 0 : i32
    %c0_i32_0 = arith.constant 0 : i32
    return %c0_i32 : i32
  }
  func.func @transform_3(%arg0: i32) -> (i32, i32) {
    %c0_i32 = arith.constant 0 : i32
    %c0_i32_0 = arith.constant 0 : i32
    return %arg0, %c0_i32 : i32, i32
  }
}

</mosaic_0001>

<bundles_post_ra>
// kernel: tpu_custom_call.1
= control target key start
LH: loop header
LB: loop body
LE: loop exit
PB: predicated region body
PF: predicated region fallthrough
CT: control target
= control target key end

     0   :  { %v225_v3 = vmov 0.0|0.0   ;;  %vm226_vm0 = vmmov 0   ;;  %v227_v6 = vmov 0.0   ;;  %s315_s0 = inlined_call_operand.vmem [shape: f32[4,128], index: 0, kind: input, shape index: {}]   ;;  %s316_s1 = inlined_call_operand.vmem [shape: f32[128,4], index: 1, kind: input, shape index: {}]   ;;  %s317_s2 = inlined_call_operand.<no memory space> [shape: f32[1], index: 2, kind: input, shape index: {}]   ;;  %s318_s3 = inlined_call_operand.hbm [shape: f32[4,4], index: 3, kind: output, shape index: {}]  }
   0x1   :  { %v17_v0 = vld [vmem:[%s316_s1] sm:$0xff]  ;;  %v18_v1 = vld [vmem:[%s316_s1 + $0x8] sm:$0xff]  ;;  %v19_v2 = vld [vmem:[%s316_s1 + $0x10] sm:$0xff]  ;;  %173 = vmatprep.subr.bf16.mxu0 %v225_v3  ;;  %170 = vmatprep.mubr.msk.f32.mxu0 %vm226_vm0, %v227_v6 }
   0x2   :  { %v174_v4 = vpack.c.bf16 %v18_v1, %v17_v0  ;;  %v20_v5 = vld [vmem:[%s316_s1 + $0x18] sm:$0xff]  ;;  %v21_v8 = vld [vmem:[%s316_s1 + $0x20] sm:$0xff]  ;;  %v22_v9 = vld [vmem:[%s316_s1 + $0x28] sm:$0xff] }
   0x3   :  { %v177_v7 = vpack.c.bf16 %v20_v5, %v19_v2 }
   0x4   :  { %175 = vmatpush3.bf16.msra.mxu0 %v174_v4 }
   0x5   :  { %176 = vmatprep.subr.bf16.mxu0 %v225_v3 }
   0x6   :  { %9 = vsyncpa [#allocation4], 0  ;;  %v180_v10 = vpack.c.bf16 %v22_v9, %v21_v8  ;;  %v23_v11 = vld [vmem:[%s316_s1 + $0x30] sm:$0xff]  ;;  %v24_v12 = vld [vmem:[%s316_s1 + $0x38] sm:$0xff]  ;;  %v34_v27 = vstv %s317_s2  ;;  %s228_s21 = smov [#allocation3]   ;;  %vm105_vm1 = vcmask 27648  }
   0x7   :  { %v183_v13 = vpack.c.bf16 %v24_v12, %v23_v11  ;;  %v25_v14 = vld [vmem:[%s316_s1 + $0x40] sm:$0xff]  ;;  %v26_v15 = vld [vmem:[%s316_s1 + $0x48] sm:$0xff]  ;;  %v27_v17 = vld [vmem:[%s316_s1 + $0x50] sm:$0xff]  ;;  %s113_s22 = sshll.u32 %s228_s21, 4  ;;  %s114_s22 = int_to_ptr.vmem [resolvable:$true] %s113_s22 }
   0x8   :  { %178 = vmatpush3.bf16.msra.mxu0 %v177_v7  ;;  %v186_v16 = vpack.c.bf16 %v26_v15, %v25_v14  ;;  %v28_v18 = vld [vmem:[%s316_s1 + $0x58] sm:$0xff]  ;;  %v29_v20 = vld [vmem:[%s316_s1 + $0x60] sm:$0xff]  ;;  %v30_v21 = vld [vmem:[%s316_s1 + $0x68] sm:$0xff]  ;;  %p206_p1 = scmp.lt.s32.totalorder %s114_s22, %s114_s22 }
   0x9   :  { %179 = vmatprep.subr.bf16.mxu0 %v225_v3  ;;  %v189_v19 = vpack.c.bf16 %v28_v18, %v27_v17  ;;  %v192_v22 = vpack.c.bf16 %v30_v21, %v29_v20  ;;  %v31_v23 = vld [vmem:[%s316_s1 + $0x70] sm:$0xff]  ;;  %v32_v24 = vld [vmem:[%s316_s1 + $0x78] sm:$0xff]  ;;  %v16_v26 = vld [vmem:[%s315_s0] sm:$0xf]  ;;  %s201_s1 = scalar_lea.vmem %s114_s22, 64 }
   0xa   :  { %v195_v25 = vpack.c.bf16 %v32_v24, %v31_v23  ;;  %p202_p0 = scmp.ne.s32.totalorder %s114_s22, %s201_s1  ;;  %p207_p2 = scmp.lt.s32.totalorder %s201_s1, %s201_s1 }
   0xc   :  { %181 = vmatpush3.bf16.msra.mxu0 %v180_v10  ;;  %p208_p3 = por %p207_p2, %p206_p1 }
   0xd   :  { %182 = vmatprep.subr.bf16.mxu0 %v225_v3 }
   0xe   :  { %p209_p4 = pnand %p208_p3, %p202_p0 }
  0x10   :  { %184 = vmatpush3.bf16.msra.mxu0 %v183_v13 }
  0x11   :  { %185 = vmatprep.subr.bf16.mxu0 %v225_v3 }
  0x14   :  { %187 = vmatpush3.bf16.msra.mxu0 %v186_v16 }
  0x15   :  { %188 = vmatprep.subr.bf16.mxu0 %v225_v3 }
  0x18   :  { %190 = vmatpush3.bf16.msra.mxu0 %v189_v19 }
  0x19   :  { %191 = vmatprep.subr.bf16.mxu0 %v225_v3 }
  0x1c   :  { %193 = vmatpush3.bf16.msra.mxu0 %v192_v22 }
  0x1d   :  { %194 = vmatprep.subr.bf16.mxu0 %v225_v3 }
  0x20   :  { %196 = vmatpush3.bf16.msra.mxu0 %v195_v25 }
  0x23   :  { %171 = vmatmul.mubr.f32.vlgmr.msra.gmra.mrb[0].mxu0 %v16_v26 }
  0xf6   :  { %v101_v28 = vpop.f32.mrb[0].mxu0 }
  0xf7   :  { %v102_v29 = vadd.f32 %v101_v28, %v34_v27  ;;  %v172_v30 = vpop.f32.mrb[1].mxu0 }
  0xf9   :  { %106 = vst.msk [vmem:[#allocation3] sm:$0xf] %vm105_vm1, %v102_v29 }
  0xfa   :  { %212 = shalt.err (!%p209_p4)
}
  0xfb   :  { %s213_s24 = scalar_lea.hbm %s318_s3, 64 }
  0xfc   :  { %p214_p5 = scmp.ne.s32.totalorder %s318_s3, %s213_s24  ;;  %p217_p6 = scmp.lt.u32.totalorder %s213_s24, %s318_s3 }
  0xfe   :  { %p219_p7 = pnand %p217_p6, %p214_p5 }
 0x100   :  { %222 = shalt.err (!%p219_p7)
}
 0x101   :  { %116 = dma.vmem_to_hbm [thread:$0]  %s114_s22, 64, %s318_s3, [#allocation4]  }
 0x102   :  { %223 = dma.done.wait [#allocation4], 64  }
 0x103   :  { %224 = vsyncadd [#allocation4], 4294967232 }
 0x104   :  { %120 = vsyncpa [#allocation4], 1 }

</bundles_post_ra>
